<compile_context>
chip_gen: v7x
topology: tpu7x:2x2x1
jax: 0.10.0
libtpu: 0.0.40
codegen_flags: <defaults>
</compile_context>

<pallas_src>
import functools

import jax
import jax.numpy as jnp
from jax.experimental import pallas as pl
from jax.experimental.pallas import tpu as pltpu


def _round_up(x, m):
    return (x + m - 1) // m * m


def _head_kernel(x_ref, w_ref, b_ref, o_ref, *, mxu_dtype):
    # LeakyReLU (negative_slope = 0.01, PyTorch default) in f32.
    x = x_ref[...]
    x = jnp.where(x >= 0, x, jnp.float32(0.01) * x)
    # Linear: x @ W + b.  bf16 multiplicands (if requested), f32 accumulation.
    y = jnp.dot(x.astype(mxu_dtype), w_ref[...],
                preferred_element_type=jnp.float32)
    o_ref[...] = (y + b_ref[...]).astype(o_ref.dtype)


def linear_cls_head(x, weight, bias, *, block_b=512, mxu_dtype=jnp.bfloat16):
    """x: (B, C) f32, weight: (C, N) f32, bias: (N,) f32 -> (B, N) f32."""
    B, C = x.shape
    N = weight.shape[1]

    # Lane-align the class dimension (avoid masked stores / wasted MXU lanes).
    Np = _round_up(N, 128)
    # Batch tile: sublane-aligned (multiple of 8), capped by requested block_b.
    TB = min(_round_up(block_b, 8), _round_up(B, 8))
    Bp = _round_up(B, TB)

    x_p = x if Bp == B else jnp.pad(x, ((0, Bp - B), (0, 0)))
    w_p = weight if Np == N else jnp.pad(weight, ((0, 0), (0, Np - N)))
    b_p = bias if Np == N else jnp.pad(bias, ((0, Np - N),))
    w_p = w_p.astype(mxu_dtype)               # halves weight DMA bytes if bf16
    b2d = b_p.reshape(1, Np).astype(jnp.float32)

    grid = (pl.cdiv(Bp, TB),)

    # VMEM budget: x double-buffered, out double-buffered, weight+bias resident
    # (Pallas double-buffers them too since their index_map is constant; on
    # v7x's 64 MiB VMEM consider pipeline_mode=pl.Buffered(1) to drop that).
    # TODO(synk): add a K-grid axis + f32 accumulator scratch only if C grows
    # past what fits in the v7x 64 MiB VMEM budget.
    needed = (2 * TB * C * x.dtype.itemsize
              + 2 * C * Np * w_p.dtype.itemsize
              + 2 * Np * 4
              + 2 * TB * Np * x.dtype.itemsize)
    vmem_limit = int(min(max(2 * needed, 32 * 1024 * 1024), 64 * 1024 * 1024))

    out = pl.pallas_call(
        functools.partial(_head_kernel, mxu_dtype=mxu_dtype),
        out_shape=jax.ShapeDtypeStruct((Bp, Np), x.dtype),
        grid_spec=pl.GridSpec(
            grid=grid,
            in_specs=[
                pl.BlockSpec((TB, C), lambda i: (i, 0)),   # streamed per tile
                pl.BlockSpec((C, Np), lambda i: (0, 0)),   # resident weight
                pl.BlockSpec((1, Np), lambda i: (0, 0)),   # resident bias
            ],
            out_specs=pl.BlockSpec((TB, Np), lambda i: (i, 0)),
        ),
        compiler_params=pltpu.CompilerParams(
            dimension_semantics=("parallel",),
            vmem_limit_bytes=vmem_limit,
        ),
    )(x_p, w_p, b2d)

    return out[:B, :N]


def init_params(key, in_channels, num_classes):
    # PyTorch init_weights: nn.Linear -> normal_(weight, mean=1, std=0.01),
    # constant_(bias, 0).  Stored as (C, N) = fc.weight.T.
    w = 1.0 + 0.01 * jax.random.normal(
        key, (in_channels, num_classes), dtype=jnp.float32
    )
    b = jnp.zeros((num_classes,), dtype=jnp.float32)
    return w, b


if __name__ == "__main__":
    batch = 8
    in_channels = 32
    num_classes = 8

    key = jax.random.PRNGKey(0)
    kx, kw = jax.random.split(key)

    x = jax.random.normal(kx, (batch, in_channels), dtype=jnp.float32)
    w, b = init_params(kw, in_channels, num_classes)

    out = linear_cls_head(x, w, b)
    out = jax.block_until_ready(out)

    # Reference check in plain JAX (f32).  bf16 multiplicands in the kernel
    # (f32 accumulation) => relaxed tolerance per the review.
    x_act = jnp.where(x >= 0, x, 0.01 * x)
    ref = x_act @ w + b
    assert out.shape == (batch, num_classes)
    assert out.dtype == x.dtype
    assert jnp.allclose(out, ref, atol=2e-2, rtol=2e-2), (
        float(jnp.max(jnp.abs(out - ref))))

    print("KERNEL_OK")
</pallas_src>

<mosaic_0001>
module attributes {stable_mosaic.version = 11 : i64} {
  func.func @_head_kernel(%arg0: i32, %arg1: memref<8x32xf32, #tpu.memory_space<vmem>>, %arg2: memref<32x128xbf16, #tpu.memory_space<vmem>>, %arg3: memref<1x128xf32, #tpu.memory_space<vmem>>, %arg4: memref<8x128xf32, #tpu.memory_space<vmem>>) attributes {dimension_semantics = [#tpu.dimension_semantics<parallel>], iteration_bounds = array<i64: 1>, scalar_prefetch = 0 : i64, scratch_operands = 0 : i64, tpu.core_type = #tpu.core_type<tc>, window_params = [{transform_indices = @transform_0, window_bounds = array<i64: 8, 32>}, {pipeline_mode = #tpu.pipeline_mode<synchronous>, transform_indices = @transform_1, window_bounds = array<i64: 32, 128>}, {pipeline_mode = #tpu.pipeline_mode<synchronous>, transform_indices = @transform_2, window_bounds = array<i64: 1, 128>}, {transform_indices = @transform_3, window_bounds = array<i64: 8, 128>}]} {
    %c0 = arith.constant 0 : index
    %c0_0 = arith.constant 0 : index
    %0 = vector.load %arg1[%c0, %c0_0] : memref<8x32xf32, #tpu.memory_space<vmem>>, vector<8x32xf32>
    %cst = arith.constant 0.000000e+00 : f32
    %1 = vector.broadcast %cst : f32 to vector<8x32xf32>
    %2 = arith.cmpf oge, %0, %1 : vector<8x32xf32>
    %cst_1 = arith.constant 0.00999999977 : f32
    %3 = vector.broadcast %cst_1 : f32 to vector<8x32xf32>
    %4 = arith.mulf %3, %0 : vector<8x32xf32>
    %5 = arith.select %2, %0, %4 : vector<8x32xi1>, vector<8x32xf32>
    %6 = arith.truncf %5 : vector<8x32xf32> to vector<8x32xbf16>
    %c0_2 = arith.constant 0 : index
    %c0_3 = arith.constant 0 : index
    %7 = vector.load %arg2[%c0_2, %c0_3] : memref<32x128xbf16, #tpu.memory_space<vmem>>, vector<32x128xbf16>
    %cst_4 = arith.constant dense<0.000000e+00> : vector<8x128xf32>
    %8 = tpu.matmul %6, %7, %cst_4 {dimension_numbers = #tpu.dot_dimension_numbers<[1], [0], [0], [1], [0, 0, 1, 1], [], []>} : vector<8x32xbf16>, vector<32x128xbf16>, vector<8x128xf32> -> vector<8x128xf32>
    %c0_5 = arith.constant 0 : index
    %c0_6 = arith.constant 0 : index
    %9 = vector.load %arg3[%c0_5, %c0_6] : memref<1x128xf32, #tpu.memory_space<vmem>>, vector<1x128xf32>
    %10 = vector.broadcast %9 : vector<1x128xf32> to vector<8x128xf32>
    %11 = arith.addf %8, %10 : vector<8x128xf32>
    %c0_7 = arith.constant 0 : index
    %c0_8 = arith.constant 0 : index
    %12 = vector.load %arg4[%c0_7, %c0_8] : memref<8x128xf32, #tpu.memory_space<vmem>>, vector<8x128xf32>
    tpu.vector_store %arg4[%c0_7, %c0_8], %11 {strides = array<i32>} : memref<8x128xf32, #tpu.memory_space<vmem>>, vector<8x128xf32>,
    return
  }
  func.func @transform_0(%arg0: i32) -> (i32, i32) {
    %c0_i32 = arith.constant 0 : i32
    %c0_i32_0 = arith.constant 0 : i32
    return %arg0, %c0_i32 : i32, i32
  }
  func.func @transform_1(%arg0: i32) -> (i32, i32) {
    %c0_i32 = arith.constant 0 : i32
    %c0_i32_0 = arith.constant 0 : i32
    %c0_i32_1 = arith.constant 0 : i32
    return %c0_i32, %c0_i32_0 : i32, i32
  }
  func.func @transform_2(%arg0: i32) -> (i32, i32) {
    %c0_i32 = arith.constant 0 : i32
    %c0_i32_0 = arith.constant 0 : i32
    %c0_i32_1 = arith.constant 0 : i32
    return %c0_i32, %c0_i32_0 : i32, i32
  }
  func.func @transform_3(%arg0: i32) -> (i32, i32) {
    %c0_i32 = arith.constant 0 : i32
    %c0_i32_0 = arith.constant 0 : i32
    return %arg0, %c0_i32 : i32, i32
  }
}

</mosaic_0001>

<bundles_post_ra>
// kernel: tpu_custom_call.1
= control target key start
LH: loop header
LB: loop body
LE: loop exit
PB: predicated region body
PF: predicated region fallthrough
CT: control target
= control target key end

     0   :  { %8 = vsyncpa [#allocation3], 0  ;;  %s300_s0 = inlined_call_operand.hbm [shape: f32[8,32], index: 0, kind: input, shape index: {}]   ;;  %s301_s1 = inlined_call_operand.hbm [shape: bf16[32,128], index: 1, kind: input, shape index: {}]   ;;  %s302_s2 = inlined_call_operand.vmem [shape: f32[1,128], index: 2, kind: input, shape index: {}]   ;;  %s303_s3 = inlined_call_operand.hbm [shape: f32[8,128], index: 3, kind: output, shape index: {}]  }
   0x1   :  { %9 = vsyncpa [#allocation6], 0 }
   0x2   :  { %10 = vsyncpa [#allocation4], 0  ;;  %s227_s12 = smov [#allocation2]   ;;  %s228_s14 = smov [#allocation5]  }
   0x3   :  { %s17_s13 = sshll.u32 %s227_s12, 4  ;;  %s26_s15 = sshll.u32 %s228_s14, 4  ;;  %s18_s13 = int_to_ptr.vmem [resolvable:$true] %s17_s13  ;;  %s254_s15 = int_to_ptr.vmem [resolvable:$true] %s26_s15 }
   0x4   :  { %s155_s18 = scalar_lea.hbm %s300_s0, 128 }
   0x5   :  { %p156_p0 = scmp.ne.s32.totalorder %s300_s0, %s155_s18  ;;  %p159_p1 = scmp.lt.u32.totalorder %s155_s18, %s300_s0 }
   0x7   :  { %p161_p2 = pnand %p159_p1, %p156_p0 }
   0x9   :  { %164 = shalt.err (!%p161_p2)
}
   0xa   :  { %s165_s23 = scalar_lea.vmem %s18_s13, 128  ;;  %p170_p4 = scmp.lt.s32.totalorder %s18_s13, %s18_s13 }
   0xb   :  { %p166_p3 = scmp.ne.s32.totalorder %s18_s13, %s165_s23  ;;  %p171_p5 = scmp.lt.s32.totalorder %s165_s23, %s165_s23 }
   0xd   :  { %p172_p6 = por %p171_p5, %p170_p4 }
   0xf   :  { %p173_p7 = pnand %p172_p6, %p166_p3 }
  0x11   :  { %176 = shalt.err (!%p173_p7)
}
  0x12   :  { %20 = dma.hbm_to_vmem [thread:$0]  %s300_s0, 128, %s18_s13, [#allocation3]  }
  0x13   :  { %s177_s28 = scalar_lea.hbm %s301_s1, 256 }
  0x14   :  { %p178_p8 = scmp.ne.s32.totalorder %s301_s1, %s177_s28  ;;  %p181_p9 = scmp.lt.u32.totalorder %s177_s28, %s301_s1 }
  0x16   :  { %p183_p10 = pnand %p181_p9, %p178_p8 }
  0x18   :  { %186 = shalt.err (!%p183_p10)
}
  0x19   :  { %s187_s6 = scalar_lea.vmem %s254_s15, 256  ;;  %p192_p12 = scmp.lt.s32.totalorder %s254_s15, %s254_s15 }
  0x1a   :  { %p188_p11 = scmp.ne.s32.totalorder %s254_s15, %s187_s6  ;;  %p193_p13 = scmp.lt.s32.totalorder %s187_s6, %s187_s6 }
  0x1c   :  { %p194_p0 = por %p193_p13, %p192_p12 }
  0x1e   :  { %p195_p1 = pnand %p194_p0, %p188_p11 }
  0x20   :  { %198 = shalt.err (!%p195_p1)
}
  0x21   :  { %s229_s0 = smov 64   ;;  %s230_s7 = smov 4  }
  0x22   :  { %32 = dma.hbm_to_vmem [thread:$0]  %s301_s1, 256, %s254_s15, [#allocation6], %s229_s0, %s229_s0, %s230_s7  }
  0x23   :  { %221 = dma.done.wait [#allocation3], 128  }
  0x24   :  { %222 = vsyncadd [#allocation3], 4294967168 }
  0x25   :  { %223 = dma.done.wait [#allocation6], 256  }
  0x26   :  { %224 = vsyncadd [#allocation6], 4294967040  ;;  %v231_v0 = vmov 0.0   ;;  %vm232_vm0 = vmmov 0   ;;  %v153_v1 = vld [vmem:[#allocation5] sm:$0xff]   ;;  %v154_v2 = vld [vmem:[#allocation5 + $0x8] sm:$0xff]  }
  0x27   :  { %138 = vmatprep.subr.bf16.mxu0 %v231_v0  ;;  %142 = vmatprep.mubr.msk.bf16.mxu0 %vm232_vm0, %v231_v0  ;;  %v42_v3 = vld [vmem:[#allocation2] sm:$0xff]  ;;  %vm70_vm2 = vcmask 261120   ;;  %s233_s11 = smov [#allocation7]  }
  0x28   :  { %139 = vmatpush3.bf16.msra.mxu0 %v153_v1  ;;  %vm43_vm1 = vcmp.ge.f32.partialorder %v42_v3, 0.0  ;;  %v44_v4 = vmul.f32 0.01, %v42_v3  ;;  %v131_v7 = vld [vmem:[%s302_s2] ss:$0 sm:$0xff]  ;;  %s121_s12 = sshll.u32 %s233_s11, 4  ;;  %s122_s12 = int_to_ptr.vmem [resolvable:$true] %s121_s12 }
  0x29   :  { %140 = vmatprep.subr.bf16.mxu0 %v231_v0  ;;  %s199_s13 = scalar_lea.vmem %s122_s12, 128  ;;  %p204_p3 = scmp.lt.s32.totalorder %s122_s12, %s122_s12 }
  0x2a   :  { %v45_v5 = vsel %vm43_vm1, %v42_v3, %v44_v4  ;;  %p200_p2 = scmp.ne.s32.totalorder %s122_s12, %s199_s13  ;;  %p205_p4 = scmp.lt.s32.totalorder %s199_s13, %s199_s13 }
  0x2b   :  { %v46_v6 = vpack.c.bf16 %v45_v5, %v45_v5 }
  0x2c   :  { %141 = vmatpush3.bf16.msra.mxu0 %v154_v2  ;;  %p206_p5 = por %p205_p4, %p204_p3 }
  0x2e   :  { %p207_p6 = pnand %p206_p5, %p200_p2 }
  0x2f   :  { %143 = vmatmul.mubr.msk.bf16.vlgmr.msra.gmra.mrb[0].mxu0 %vm70_vm2, %v46_v6 }
 0x102   :  { %v108_v8 = vpop.f32.mrb[0].mxu0 }
 0x103   :  { %v109_v9 = vadd.f32 %v131_v7, %v108_v8  ;;  %v144_v10 = vpop.f32.mrb[1].mxu0 }
 0x104   :  { %v111_v11 = vpop.f32.mrb[2].mxu0 }
 0x105   :  { %114 = vst [vmem:[#allocation7] sm:$0xff] %v109_v9  ;;  %v145_v12 = vpop.f32.mrb[3].mxu0 }
 0x106   :  { %210 = shalt.err (!%p207_p6)
}
 0x107   :  { %s211_s2 = scalar_lea.hbm %s303_s3, 128 }
 0x108   :  { %p212_p7 = scmp.ne.s32.totalorder %s303_s3, %s211_s2  ;;  %p215_p8 = scmp.lt.u32.totalorder %s211_s2, %s303_s3 }
 0x10a   :  { %p217_p9 = pnand %p215_p8, %p212_p7 }
 0x10c   :  { %220 = shalt.err (!%p217_p9)
}
 0x10d   :  { %124 = dma.vmem_to_hbm [thread:$0]  %s122_s12, 128, %s303_s3, [#allocation4]  }
 0x10e   :  { %225 = dma.done.wait [#allocation4], 128  }
 0x10f   :  { %226 = vsyncadd [#allocation4], 4294967168 }
 0x110   :  { %128 = vsyncpa [#allocation3], 1 }
 0x111   :  { %129 = vsyncpa [#allocation6], 1 }
 0x112   :  { %130 = vsyncpa [#allocation4], 1 }

</bundles_post_ra>
